<compile_context>
chip_gen: v6e
topology: v6e:2x2x1
jax: 0.10.0
libtpu: 0.0.40
codegen_flags: <defaults>
</compile_context>

<pallas_src>
import functools
from functools import partial

import numpy as np
import jax
import jax.numpy as jnp
from jax import lax
from jax.experimental import pallas as pl
from jax.experimental.pallas import tpu as pltpu

BN_EPS = 1e-5
PARSE_SIZE = 512          # FaceParser downsample_cfg size
NUM_CLASSES = 9


# ----------------------------------------------------------------------------
# small helpers
# ----------------------------------------------------------------------------
def _round_up(v, m):
    return (v + m - 1) // m * m


def _pick_tile(dim, opts):
    for t in opts:
        if dim % t == 0:
            return t
    return dim


# ----------------------------------------------------------------------------
# Pallas kernels (built & cached per shape signature)
# ----------------------------------------------------------------------------
@functools.lru_cache(maxsize=None)
def _make_matmul(Mp, Kp, Np, tm, tn, tk, relu, has_res, out_dtype_name):
    """C = act(A @ B + bias [+ residual]); bf16 inputs, f32 MXU accumulation."""
    out_dtype = jnp.dtype(out_dtype_name)
    nk = Kp // tk

    def kernel(*refs):
        if has_res:
            a_ref, b_ref, bias_ref, res_ref, o_ref, acc_ref = refs
        else:
            a_ref, b_ref, bias_ref, o_ref, acc_ref = refs
            res_ref = None

        @pl.when(pl.program_id(2) == 0)
        def _():
            acc_ref[...] = jnp.zeros_like(acc_ref)

        acc_ref[...] += jnp.dot(a_ref[...], b_ref[...],
                                preferred_element_type=jnp.float32)

        @pl.when(pl.program_id(2) == nk - 1)
        def _():
            r = acc_ref[...] + bias_ref[...]
            if has_res:
                r = r + res_ref[...].astype(jnp.float32)
            if relu:
                r = jnp.maximum(r, 0.0)
            o_ref[...] = r.astype(o_ref.dtype)

    in_specs = [
        pl.BlockSpec((tm, tk), lambda i, j, k: (i, k)),
        pl.BlockSpec((tk, tn), lambda i, j, k: (k, j)),
        pl.BlockSpec((1, tn), lambda i, j, k: (0, j)),
    ]
    if has_res:
        in_specs.append(pl.BlockSpec((tm, tn), lambda i, j, k: (i, j)))

    return pl.pallas_call(
        kernel,
        out_shape=jax.ShapeDtypeStruct((Mp, Np), out_dtype),
        grid_spec=pltpu.PrefetchScalarGridSpec(
            num_scalar_prefetch=0,
            grid=(Mp // tm, Np // tn, nk),
            in_specs=in_specs,
            out_specs=pl.BlockSpec((tm, tn), lambda i, j, k: (i, j)),
            scratch_shapes=[pltpu.VMEM((tm, tn), jnp.float32)],
        ),
        compiler_params=pltpu.CompilerParams(
            dimension_semantics=("parallel", "parallel", "arbitrary")),
    )


@functools.lru_cache(maxsize=None)
def _make_softmax(C, Mp, tn):
    """Softmax over the (small) leading channel axis; lanes carry pixels (dense)."""

    def kernel(x_ref, o_ref):
        x = x_ref[...]                                # (C, tn)
        m = jnp.max(x, axis=0, keepdims=True)
        e = jnp.exp(x - m)
        o_ref[...] = e / jnp.sum(e, axis=0, keepdims=True)

    return pl.pallas_call(
        kernel,
        out_shape=jax.ShapeDtypeStruct((C, Mp), jnp.float32),
        grid=(Mp // tn,),
        in_specs=[pl.BlockSpec((C, tn), lambda i: (0, i))],
        out_specs=pl.BlockSpec((C, tn), lambda i: (0, i)),
        compiler_params=pltpu.CompilerParams(dimension_semantics=("parallel",)),
    )


# ----------------------------------------------------------------------------
# wrappers around the kernels
# ----------------------------------------------------------------------------
def _matmul_bias_act(a, w, b, relu, residual=None, out_dtype=jnp.bfloat16):
    M, K = a.shape
    _, N = w.shape
    Mp, Kp, Np = _round_up(M, 128), _round_up(K, 128), _round_up(N, 128)

    a = a.astype(jnp.bfloat16)
    w = w.astype(jnp.bfloat16)
    if (Mp, Kp) != (M, K):
        a = jnp.pad(a, ((0, Mp - M), (0, Kp - K)))
    if (Kp, Np) != (K, N):
        w = jnp.pad(w, ((0, Kp - K), (0, Np - N)))
    b2 = (jnp.pad(b, (0, Np - N)) if Np != N else b).astype(jnp.float32).reshape(1, Np)

    tm = _pick_tile(Mp, (512, 256, 128))
    tn = _pick_tile(Np, (512, 256, 128))
    # 1x1 / small-K convs: collapse the K grid axis (weights fully VMEM resident).
    tk = Kp if Kp <= 2048 else _pick_tile(Kp, (1024, 512, 256, 128))

    args = [a, w, b2]
    has_res = residual is not None
    if has_res:
        r = residual.astype(jnp.bfloat16)
        if (Mp, Np) != (M, N):
            r = jnp.pad(r, ((0, Mp - M), (0, Np - N)))
        args.append(r)

    out = _make_matmul(Mp, Kp, Np, tm, tn, tk, bool(relu), has_res,
                       jnp.dtype(out_dtype).name)(*args)
    return out[:M, :N]


def _im2col(x, kh, kw, stride, dilation, padding, pad_value):
    B, H, W, C = x.shape
    if padding:
        x = jnp.pad(x, ((0, 0), (padding, padding), (padding, padding), (0, 0)),
                    constant_values=pad_value)
    Hp, Wp = H + 2 * padding, W + 2 * padding
    OH = (Hp - (dilation * (kh - 1) + 1)) // stride + 1
    OW = (Wp - (dilation * (kw - 1) + 1)) // stride + 1
    cols = []
    for di in range(kh):
        for dj in range(kw):
            r0, c0 = di * dilation, dj * dilation
            cols.append(lax.slice(
                x, (0, r0, c0, 0),
                (B, r0 + (OH - 1) * stride + 1, c0 + (OW - 1) * stride + 1, C),
                (1, stride, stride, 1)))
    # TODO(synk): replace materialized im2col with a direct-conv (tap-accumulating)
    # Pallas kernel for the large dilated ASPP 3x3 convs; for now the buffer is bf16.
    return jnp.concatenate(cols, axis=-1), OH, OW


@partial(jax.jit, static_argnames=("kh", "kw", "stride", "dilation", "padding",
                                   "pad_value", "relu", "out_f32"))
def conv2d(x, w2d, b, residual=None, *, kh, kw, stride=1, dilation=1, padding=0,
           pad_value=0.0, relu=False, out_f32=False):
    """x: NHWC; w2d: (kh*kw*I, O) matmul-layout weight (BN folded); b: (O,)."""
    B, H, W, C = x.shape
    N = w2d.shape[1]
    x = x.astype(jnp.bfloat16)
    if kh == 1 and kw == 1 and stride == 1 and padding == 0:
        a = x.reshape(B * H * W, C)
        OH, OW = H, W
    else:
        a, OH, OW = _im2col(x, kh, kw, stride, dilation, padding, pad_value)
        a = a.reshape(B * OH * OW, kh * kw * C)
    res2d = None
    if residual is not None:
        res2d = residual.reshape(B * OH * OW, residual.shape[-1])
    out_dtype = jnp.float32 if out_f32 else jnp.bfloat16
    out = _matmul_bias_act(a, w2d, b, relu, res2d, out_dtype=out_dtype)
    return out.reshape(B, OH, OW, N)


def conv_bn(x, p, stride=1, dilation=1, padding=0, pad_value=0.0, relu=True,
            residual=None, out_f32=False):
    return conv2d(x, p['w'], p['b'], residual, kh=p['k'], kw=p['k'],
                  stride=stride, dilation=dilation, padding=padding,
                  pad_value=pad_value, relu=relu, out_f32=out_f32)


def softmax_channels(x_nchw):
    """Softmax over dim=1 of an NCHW tensor, lane-dense over pixels."""
    B, C, H, W = x_nchw.shape
    M = B * H * W
    xt = jnp.transpose(x_nchw, (1, 0, 2, 3)).reshape(C, M).astype(jnp.float32)
    Mp = _round_up(M, 512)
    if Mp != M:
        xt = jnp.pad(xt, ((0, 0), (0, Mp - M)))
    tn = _pick_tile(Mp, (8192, 4096, 2048, 1024, 512))
    y = _make_softmax(C, Mp, tn)(xt)
    y = y[:, :M].reshape(C, B, H, W)
    return jnp.transpose(y, (1, 0, 2, 3))


@jax.jit
def maxpool3x3s2(x):
    # MaxPool2d(kernel_size=3, stride=2, padding=1); small one-off op kept as glue
    neg_inf = jnp.array(-jnp.inf, dtype=x.dtype)
    return lax.reduce_window(x, neg_inf, lax.max,
                             (1, 3, 3, 1), (1, 2, 2, 1),
                             ((0, 0), (1, 1), (1, 1), (0, 0)))


def area_resize_512(x):
    """F.interpolate(mode='area', size=(512,512)) for integer-ratio inputs (NHWC)."""
    B, H, W, C = x.shape
    if PARSE_SIZE % H == 0 and PARSE_SIZE % W == 0:
        # area-upsample with integer factor == adaptive avg pool == nearest repeat
        x = jnp.repeat(jnp.repeat(x, PARSE_SIZE // H, axis=1), PARSE_SIZE // W, axis=2)
    elif H % PARSE_SIZE == 0 and W % PARSE_SIZE == 0:
        fh, fw = H // PARSE_SIZE, W // PARSE_SIZE
        x = x.reshape(B, PARSE_SIZE, fh, PARSE_SIZE, fw, C).mean(axis=(2, 4))
    else:
        # TODO(synk): general (non-integer-ratio) adaptive-average 'area' resize
        raise NotImplementedError("area resize requires integer scale factor")
    return x


# ----------------------------------------------------------------------------
# deterministic parameter construction (deeplabv3_resnet50, num_classes=9)
# weights are stored pre-transposed to matmul layout (kh*kw*I, O), BN folded, bf16.
# ----------------------------------------------------------------------------
def build_params(key, num_classes=NUM_CLASSES):
    kit = iter(jax.random.split(key, 256))
    # fresh BatchNorm (gamma=1, beta=0, running_mean=0, running_var=1) folded in
    bn_scale = float(1.0 / np.sqrt(1.0 + BN_EPS))

    def conv_w(out_c, in_c, k):
        fan_in = in_c * k * k
        std = 0.5 * float(np.sqrt(2.0 / fan_in))
        return jax.random.normal(next(kit), (out_c, in_c, k, k), jnp.float32) * std

    def to_mat(w):  # (O, I, kh, kw) -> (kh*kw*I, O)
        O, I, kh, kw = w.shape
        return jnp.transpose(w, (2, 3, 1, 0)).reshape(kh * kw * I, O)

    def cb(out_c, in_c, k):
        wm = to_mat(conv_w(out_c, in_c, k)) * bn_scale
        return {'w': wm.astype(jnp.bfloat16),
                'b': jnp.zeros((out_c,), jnp.float32), 'k': k}

    # stem conv7x7 with the input affine (img*2-1) folded in:
    #   conv_pad0(2x-1) == conv_pad0.5(x; 2w) - sum(w)   (exact, incl. boundaries)
    wm_stem = to_mat(conv_w(64, 3, 7)) * bn_scale
    p = {'stem': {'w': (2.0 * wm_stem).astype(jnp.bfloat16),
                  'b': -jnp.sum(wm_stem, axis=0), 'k': 7}}

    state = {'inplanes': 64, 'dilation': 1}

    def make_layer(planes, blocks, stride, dilate):
        prev_dil = state['dilation']
        if dilate:
            state['dilation'] *= stride
            stride = 1
        layer = []
        inplanes = state['inplanes']
        blk = {'conv1': cb(planes, inplanes, 1),
               'conv2': cb(planes, planes, 3),
               'conv3': cb(planes * 4, planes, 1),
               'stride': stride, 'dilation': prev_dil}
        if stride != 1 or inplanes != planes * 4:
            blk['down'] = cb(planes * 4, inplanes, 1)
        layer.append(blk)
        state['inplanes'] = planes * 4
        for _ in range(1, blocks):
            layer.append({'conv1': cb(planes, planes * 4, 1),
                          'conv2': cb(planes, planes, 3),
                          'conv3': cb(planes * 4, planes, 1),
                          'stride': 1, 'dilation': state['dilation']})
        return layer

    # ResNet50 backbone, output stride 8 (replace_stride_with_dilation=[F, T, T])
    p['layer1'] = make_layer(64, 3, 1, False)
    p['layer2'] = make_layer(128, 4, 2, False)
    p['layer3'] = make_layer(256, 6, 2, True)
    p['layer4'] = make_layer(512, 3, 2, True)

    # DeepLabHead: ASPP(2048, [12,24,36]) + 3x3 conv + 1x1 classifier
    p['aspp0'] = cb(256, 2048, 1)
    p['aspp_r'] = [cb(256, 2048, 3) for _ in (12, 24, 36)]
    p['aspp_pool'] = cb(256, 2048, 1)
    p['aspp_proj'] = cb(256, 5 * 256, 1)
    p['head_conv'] = cb(256, 256, 3)
    p['classifier'] = {
        'w': to_mat(conv_w(num_classes, 256, 1)).astype(jnp.bfloat16),
        'b': jax.random.normal(next(kit), (num_classes,), jnp.float32) * 0.01,
        'k': 1,
    }
    return p


# ----------------------------------------------------------------------------
# forward pass
# ----------------------------------------------------------------------------
def bottleneck_fwd(x, p):
    identity = x
    if 'down' in p:
        identity = conv_bn(x, p['down'], stride=p['stride'], relu=False)
    out = conv_bn(x, p['conv1'], relu=True)
    out = conv_bn(out, p['conv2'], stride=p['stride'], dilation=p['dilation'],
                  padding=p['dilation'], relu=True)
    # residual add + ReLU fused into the conv3 matmul epilogue
    return conv_bn(out, p['conv3'], relu=True, residual=identity)


def face_parser_forward(img_nchw, params):
    """FaceParser.forward: resize-to-512 (area) -> *2-1 -> deeplabv3 -> softmax(dim=1)."""
    x = jnp.transpose(img_nchw.astype(jnp.float32), (0, 2, 3, 1))  # NCHW -> NHWC

    if img_nchw.shape[-1] != PARSE_SIZE:
        x = area_resize_512(x)
    x = x.astype(jnp.bfloat16)

    # --- ResNet50 backbone (dilated, OS=8); img*2-1 folded into the stem conv ---
    x = conv_bn(x, params['stem'], stride=2, padding=3, pad_value=0.5, relu=True)
    x = maxpool3x3s2(x)
    for name in ('layer1', 'layer2', 'layer3', 'layer4'):
        for blk in params[name]:
            x = bottleneck_fwd(x, blk)
    feat = x                                       # (B, 64, 64, 2048) bf16

    # --- ASPP ---
    branches = [conv_bn(feat, params['aspp0'], relu=True)]
    for i, rate in enumerate((12, 24, 36)):
        branches.append(conv_bn(feat, params['aspp_r'][i],
                                dilation=rate, padding=rate, relu=True))

    # global-pool branch folded: its projection contribution is spatially constant,
    # so it is added (pre-ReLU) as the residual of the projection conv.
    B, Hf, Wf, _ = feat.shape
    featf = feat.astype(jnp.float32)
    pooled = jnp.mean(featf, axis=(1, 2))                                  # (B, 2048)
    pooled = jnp.maximum(pooled @ params['aspp_pool']['w'].astype(jnp.float32)
                         + params['aspp_pool']['b'], 0.0)                  # (B, 256)
    w_proj = params['aspp_proj']['w']                                      # (1280, 256)
    pool_contrib = pooled @ w_proj[4 * 256:].astype(jnp.float32)           # (B, 256)
    pool_res = jnp.broadcast_to(
        pool_contrib.astype(jnp.bfloat16)[:, None, None, :], (B, Hf, Wf, 256))

    cat = jnp.concatenate(branches, axis=-1)                               # (B,64,64,1024)
    proj_p = {'w': w_proj[:4 * 256], 'b': params['aspp_proj']['b'], 'k': 1}
    x = conv_bn(cat, proj_p, relu=True, residual=pool_res)  # Dropout(0.5) is id in eval

    # --- head ---
    x = conv_bn(x, params['head_conv'], padding=1, relu=True)
    logits = conv_bn(x, params['classifier'], relu=False, out_f32=True)    # (B,64,64,9)

    # lane-dense tail: NCHW (W=512 on lanes) -> bilinear upsample -> channel softmax
    logits = jnp.transpose(logits, (0, 3, 1, 2))                           # (B,9,64,64)
    logits = jax.image.resize(
        logits, (logits.shape[0], logits.shape[1], PARSE_SIZE, PARSE_SIZE),
        method='bilinear')
    return softmax_channels(logits)                                        # (B,9,512,512)


# ----------------------------------------------------------------------------
if __name__ == "__main__":
    key = jax.random.PRNGKey(0)
    pkey, xkey = jax.random.split(key)

    params = build_params(pkey, num_classes=NUM_CLASSES)
    img = jax.random.uniform(xkey, (1, 3, 64, 64), jnp.float32)   # NCHW image in [0,1]

    out = face_parser_forward(img, params)
    out = jax.block_until_ready(out)

    assert out.shape == (1, NUM_CLASSES, PARSE_SIZE, PARSE_SIZE), out.shape
    assert bool(jnp.all(jnp.isfinite(out)))
    sums = jnp.sum(out, axis=1)
    assert bool(jnp.all(jnp.abs(sums - 1.0) < 1e-3))
    print("KERNEL_OK")
</pallas_src>

<mosaic_0001>
module attributes {stable_mosaic.version = 11 : i64} {
  func.func @kernel(%arg0: i32, %arg1: i32, %arg2: i32, %arg3: memref<512x256xbf16, #tpu.memory_space<vmem>>, %arg4: memref<256x128xbf16, #tpu.memory_space<vmem>>, %arg5: memref<1x128xf32, #tpu.memory_space<vmem>>, %arg6: memref<512x128xbf16, #tpu.memory_space<vmem>>, %arg7: memref<512x128xf32, #tpu.memory_space<vmem>>) attributes {dimension_semantics = [#tpu.dimension_semantics<parallel>, #tpu.dimension_semantics<parallel>, #tpu.dimension_semantics<arbitrary>], iteration_bounds = array<i64: 128, 1, 1>, scalar_prefetch = 0 : i64, scratch_operands = 1 : i64, tpu.core_type = #tpu.core_type<tc>, window_params = [{transform_indices = @transform_0, window_bounds = array<i64: 512, 256>}, {transform_indices = @transform_1, window_bounds = array<i64: 256, 128>}, {transform_indices = @transform_2, window_bounds = array<i64: 1, 128>}, {transform_indices = @transform_3, window_bounds = array<i64: 512, 128>}]} {
    %c0_i32 = arith.constant 0 : i32
    %0 = arith.cmpi eq, %arg2, %c0_i32 : i32
    %1 = arith.extui %0 : i1 to i32
    %c0_i32_0 = arith.constant 0 : i32
    %2 = arith.cmpi ne, %1, %c0_i32_0 : i32
    scf.if %2 {
      %cst_10 = arith.constant 0.000000e+00 : f32
      %12 = vector.broadcast %cst_10 : f32 to vector<512x128xf32>
      %c0_11 = arith.constant 0 : index
      %c0_12 = arith.constant 0 : index
      %13 = vector.load %arg7[%c0_11, %c0_12] : memref<512x128xf32, #tpu.memory_space<vmem>>, vector<512x128xf32>
      tpu.vector_store %arg7[%c0_11, %c0_12], %12 {strides = array<i32>} : memref<512x128xf32, #tpu.memory_space<vmem>>, vector<512x128xf32>,
    } else {
    }
    %c0 = arith.constant 0 : index
    %c0_1 = arith.constant 0 : index
    %3 = vector.load %arg7[%c0, %c0_1] : memref<512x128xf32, #tpu.memory_space<vmem>>, vector<512x128xf32>
    %c0_2 = arith.constant 0 : index
    %c0_3 = arith.constant 0 : index
    %4 = vector.load %arg3[%c0_2, %c0_3] : memref<512x256xbf16, #tpu.memory_space<vmem>>, vector<512x256xbf16>
    %c0_4 = arith.constant 0 : index
    %c0_5 = arith.constant 0 : index
    %5 = vector.load %arg4[%c0_4, %c0_5] : memref<256x128xbf16, #tpu.memory_space<vmem>>, vector<256x128xbf16>
    %cst = arith.constant dense<0.000000e+00> : vector<512x128xf32>
    %6 = tpu.matmul %4, %5, %cst {dimension_numbers = #tpu.dot_dimension_numbers<[1], [0], [0], [1], [0, 0, 1, 1], [], []>} : vector<512x256xbf16>, vector<256x128xbf16>, vector<512x128xf32> -> vector<512x128xf32>
    %7 = arith.addf %3, %6 : vector<512x128xf32>
    %c0_6 = arith.constant 0 : index
    %c0_7 = arith.constant 0 : index
    %8 = vector.load %arg7[%c0_6, %c0_7] : memref<512x128xf32, #tpu.memory_space<vmem>>, vector<512x128xf32>
    tpu.vector_store %arg7[%c0_6, %c0_7], %7 {strides = array<i32>} : memref<512x128xf32, #tpu.memory_space<vmem>>, vector<512x128xf32>,
    %c0_i32_8 = arith.constant 0 : i32
    %9 = arith.cmpi eq, %arg2, %c0_i32_8 : i32
    %10 = arith.extui %9 : i1 to i32
    %c0_i32_9 = arith.constant 0 : i32
    %11 = arith.cmpi ne, %10, %c0_i32_9 : i32
    scf.if %11 {
      %c0_10 = arith.constant 0 : index
      %c0_11 = arith.constant 0 : index
      %12 = vector.load %arg7[%c0_10, %c0_11] : memref<512x128xf32, #tpu.memory_space<vmem>>, vector<512x128xf32>
      %c0_12 = arith.constant 0 : index
      %c0_13 = arith.constant 0 : index
      %13 = vector.load %arg5[%c0_12, %c0_13] : memref<1x128xf32, #tpu.memory_space<vmem>>, vector<1x128xf32>
      %14 = vector.broadcast %13 : vector<1x128xf32> to vector<512x128xf32>
      %15 = arith.addf %12, %14 : vector<512x128xf32>
      %cst_14 = arith.constant 0.000000e+00 : f32
      %16 = vector.broadcast %cst_14 : f32 to vector<512x128xf32>
      %17 = arith.maximumf %15, %16 : vector<512x128xf32>
      %18 = arith.truncf %17 : vector<512x128xf32> to vector<512x128xbf16>
      %c0_15 = arith.constant 0 : index
      %c0_16 = arith.constant 0 : index
      %19 = vector.load %arg6[%c0_15, %c0_16] : memref<512x128xbf16, #tpu.memory_space<vmem>>, vector<512x128xbf16>
      tpu.vector_store %arg6[%c0_15, %c0_16], %18 {strides = array<i32>} : memref<512x128xbf16, #tpu.memory_space<vmem>>, vector<512x128xbf16>,
    } else {
    }
    return
  }
  func.func @transform_0(%arg0: i32, %arg1: i32, %arg2: i32) -> (i32, i32) {
    %c0_i32 = arith.constant 0 : i32
    return %arg0, %arg2 : i32, i32
  }
  func.func @transform_1(%arg0: i32, %arg1: i32, %arg2: i32) -> (i32, i32) {
    %c0_i32 = arith.constant 0 : i32
    return %arg2, %arg1 : i32, i32
  }
  func.func @transform_2(%arg0: i32, %arg1: i32, %arg2: i32) -> (i32, i32) {
    %c0_i32 = arith.constant 0 : i32
    %c0_i32_0 = arith.constant 0 : i32
    return %c0_i32, %arg1 : i32, i32
  }
  func.func @transform_3(%arg0: i32, %arg1: i32, %arg2: i32) -> (i32, i32) {
    %c0_i32 = arith.constant 0 : i32
    return %arg0, %arg1 : i32, i32
  }
}

</mosaic_0001>

<bundles_post_ra>
// kernel: conv2d.1
= control target key start
LH: loop header
LB: loop body
LE: loop exit
PB: predicated region body
PF: predicated region fallthrough
CT: control target
= control target key end

     0   :  { %s2594_s12 = smov 0   ;;  %s2596_s13 = smov 0   ;;  %s2880_s0 = inlined_call_operand.vmem [shape: bf16[65536,256], index: 0, kind: input, shape index: {}]   ;;  %s2881_s1 = inlined_call_operand.vmem [shape: bf16[256,128], index: 1, kind: input, shape index: {}]   ;;  %s2882_s2 = inlined_call_operand.vmem [shape: f32[1,128], index: 2, kind: input, shape index: {}]   ;;  %s2883_s3 = inlined_call_operand.vmem [shape: bf16[65536,128], index: 3, kind: output, shape index: {}]  }
   0x1   :  { %s2598_s14 = smov 0  }
   0x2 LB: > { %s32_s15 = sadd.s32 1, %s2567_s13  ;;  %p1971_p0 = scmp.ge.s32.totalorder %s2571_s14, 1  ;;  %s2571_s14 = sphi %s2598_s14, %s13_s14   ;;  %s2567_s13 = sphi %s2596_s13, %s2885_s13   ;;  %s2563_s12 = sphi %s2594_s12, %s2884_s12  }
   0x3   : > { %p34_p1 = scmp.ge.s32.totalorder %s32_s15, 128  ;;  %p191_p2 = scmp.lt.s32.totalorder %s2571_s14, 129 }
   0x5   : > { %s2887_s15 = smov (%p34_p1, %s32_s15), 0  ;;  %p192_p3 = pnand %p1971_p0, %p191_p2 }
   0x6   : > { %s1972_s18 = sshll.u32 (!%p192_p3), %s2563_s12, 6 }
   0x7   : > { %195 = sbr.rel (%p192_p3) target bundleno = 401 (0x191), region = 32  ;;  %p236_p4 = scmp.lt.s32.totalorder (!%p192_p3), %s1972_s18, 8191 }
   0xc   : > { %v2437_v0 = vld [vmem:[%s2881_s1 + $0x38] sm:$0xff]   ;;  %v2573_v1 = vmov 0   ;;  %v2438_v2 = vld [vmem:[%s2881_s1 + $0x30] sm:$0xff]   ;;  %v2439_v3 = vld [vmem:[%s2881_s1 + $0x28] sm:$0xff]   ;;  %s2889_s18 = smov (!%p236_p4, %s1972_s18), 8191 }
   0xd   : > { %912 = vmatprep.subr.bf16.mxu0 %v2573_v1  ;;  %2380 = vmatprep.subr.bf16.mxu1 %v2573_v1  ;;  %v2440_v4 = vld [vmem:[%s2881_s1 + $0x20] sm:$0xff]   ;;  %s2124_s25 = sshll.u32 %s2889_s18, 3  ;;  %v2441_v5 = vld [vmem:[%s2881_s1 + $0x18] sm:$0xff]   ;;  %v2442_v7 = vld [vmem:[%s2881_s1 + $0x10] sm:$0xff]   ;;  %s1976_s6 = sshll.u32 %s2889_s18, 2 }
   0xe   : > { %913 = vmatpush1.bf16.msra.mxu0 %v2437_v0  ;;  %2396 = vmatpush1.bf16.msra.mxu1 %v2437_v0  ;;  %s2641_s30 = scalar_lea.vmem %s2880_s0, %s2124_s25  ;;  %v2443_v9 = vld [vmem:[%s2881_s1 + $0x8] sm:$0xff]   ;;  %v2444_v10 = vld [vmem:[%s2881_s1] sm:$0xff]   ;;  %v2445_v11 = vld [vmem:[%s2881_s1 + $0x78] sm:$0xff]   ;;  %s2777_s8 = scalar_lea.vmem %s2883_s3, %s1976_s6 }
   0xf   : > { %914 = vmatprep.subr.bf16.mxu0 %v2573_v1  ;;  %2381 = vmatprep.subr.bf16.mxu1 %v2573_v1  ;;  %v2455_v6 = vld [vmem:[%s2641_s30 + $0x4] ss:$8 sps:$4 sm:$0xff]   ;;  %v2446_v12 = vld [vmem:[%s2881_s1 + $0x70] sm:$0xff]   ;;  %v2449_v15 = vld [vmem:[%s2881_s1 + $0x58] sm:$0xff]  }
  0x10   : > { %v2458_v8 = vld [vmem:[%s2641_s30 + $0x104] ss:$8 sps:$4 sm:$0xff]   ;;  %944 = vmatprep.mubr.bf16.mxu0 %v2455_v6  ;;  %v2450_v16 = vld [vmem:[%s2881_s1 + $0x50] sm:$0xff]   ;;  %v2453_v19 = vld [vmem:[%s2641_s30] ss:$8 sps:$4 sm:$0xff]  }
  0x11   : > { %1072 = vmatprep.mubr.bf16.mxu1 %v2458_v8  ;;  %v2447_v13 = vld [vmem:[%s2881_s1 + $0x68] sm:$0xff]   ;;  %v2448_v14 = vld [vmem:[%s2881_s1 + $0x60] sm:$0xff]   ;;  %v2459_v21 = vld [vmem:[%s2641_s30 + $0x14] ss:$8 sps:$4 sm:$0xff]  }
  0x12   : > { %915 = vmatpush1.bf16.msra.mxu0 %v2438_v2  ;;  %2397 = vmatpush1.bf16.msra.mxu1 %v2438_v2  ;;  %v2451_v17 = vld [vmem:[%s2881_s1 + $0x48] sm:$0xff]   ;;  %v2452_v18 = vld [vmem:[%s2881_s1 + $0x40] sm:$0xff]   ;;  %v2461_v22 = vld [vmem:[%s2641_s30 + $0x114] ss:$8 sps:$4 sm:$0xff]  }
  0x13   : > { %916 = vmatprep.subr.bf16.mxu0 %v2573_v1  ;;  %2382 = vmatprep.subr.bf16.mxu1 %v2573_v1  ;;  %v2456_v20 = vld [vmem:[%s2641_s30 + $0x100] ss:$8 sps:$4 sm:$0xff]   ;;  %v2463_v23 = vld [vmem:[%s2641_s30 + $0x10] ss:$8 sps:$4 sm:$0xff]   ;;  %v2465_v25 = vld [vmem:[%s2641_s30 + $0x24] ss:$8 sps:$4 sm:$0xff]  }
  0x14   : > { %v2464_v24 = vld [vmem:[%s2641_s30 + $0x110] ss:$8 sps:$4 sm:$0xff]   ;;  %v2467_v26 = vld [vmem:[%s2641_s30 + $0x124] ss:$8 sps:$4 sm:$0xff]   ;;  %v2469_v27 = vld [vmem:[%s2641_s30 + $0x20] ss:$8 sps:$4 sm:$0xff]  }
  0x15   : > { %v2470_v28 = vld [vmem:[%s2641_s30 + $0x120] ss:$8 sps:$4 sm:$0xff]   ;;  %v2471_v29 = vld [vmem:[%s2641_s30 + $0x34] ss:$8 sps:$4 sm:$0xff]   ;;  %v2475_v31 = vld [vmem:[%s2641_s30 + $0x30] ss:$8 sps:$4 sm:$0xff]  }
  0x16   : > { %917 = vmatpush1.bf16.msra.mxu0 %v2439_v3  ;;  %2398 = vmatpush1.bf16.msra.mxu1 %v2439_v3  ;;  %v2473_v30 = vld [vmem:[%s2641_s30 + $0x134] ss:$8 sps:$4 sm:$0xff]   ;;  %v2476_v32 = vld [vmem:[%s2641_s30 + $0x130] ss:$8 sps:$4 sm:$0xff]   ;;  %v2477_v33 = vld [vmem:[%s2641_s30 + $0x44] ss:$8 sps:$4 sm:$0xff]  }
  0x17   : > { %918 = vmatprep.subr.bf16.mxu0 %v2573_v1  ;;  %2383 = vmatprep.subr.bf16.mxu1 %v2573_v1  ;;  %v2479_v34 = vld [vmem:[%s2641_s30 + $0x144] ss:$8 sps:$4 sm:$0xff]   ;;  %v2481_v35 = vld [vmem:[%s2641_s30 + $0x40] ss:$8 sps:$4 sm:$0xff]   ;;  %v2483_v37 = vld [vmem:[%s2641_s30 + $0x54] ss:$8 sps:$4 sm:$0xff]  }
  0x18   : > { %v2482_v36 = vld [vmem:[%s2641_s30 + $0x140] ss:$8 sps:$4 sm:$0xff]   ;;  %v2485_v38 = vld [vmem:[%s2641_s30 + $0x154] ss:$8 sps:$4 sm:$0xff]   ;;  %v2487_v39 = vld [vmem:[%s2641_s30 + $0x50] ss:$8 sps:$4 sm:$0xff]  }
  0x19   : > { %v2488_v40 = vld [vmem:[%s2641_s30 + $0x150] ss:$8 sps:$4 sm:$0xff]   ;;  %v2489_v41 = vld [vmem:[%s2641_s30 + $0x64] ss:$8 sps:$4 sm:$0xff]   ;;  %v2493_v43 = vld [vmem:[%s2641_s30 + $0x60] ss:$8 sps:$4 sm:$0xff]  }
  0x1a   : > { %919 = vmatpush1.bf16.msra.mxu0 %v2440_v4  ;;  %2399 = vmatpush1.bf16.msra.mxu1 %v2440_v4  ;;  %v2491_v42 = vld [vmem:[%s2641_s30 + $0x164] ss:$8 sps:$4 sm:$0xff]   ;;  %v2494_v44 = vld [vmem:[%s2641_s30 + $0x160] ss:$8 sps:$4 sm:$0xff]   ;;  %v2495_v45 = vld [vmem:[%s2641_s30 + $0x74] ss:$8 sps:$4 sm:$0xff]  }
  0x1b   : > { %920 = vmatprep.subr.bf16.mxu0 %v2573_v1  ;;  %2384 = vmatprep.subr.bf16.mxu1 %v2573_v1  ;;  %v2497_v46 = vld [vmem:[%s2641_s30 + $0x174] ss:$8 sps:$4 sm:$0xff]   ;;  %v2499_v47 = vld [vmem:[%s2641_s30 + $0x70] ss:$8 sps:$4 sm:$0xff]   ;;  %v2501_v49 = vld [vmem:[%s2641_s30 + $0x84] ss:$8 sps:$4 sm:$0xff]  }
  0x1c   : > { %v2500_v48 = vld [vmem:[%s2641_s30 + $0x170] ss:$8 sps:$4 sm:$0xff]   ;;  %v2503_v50 = vld [vmem:[%s2641_s30 + $0x184] ss:$8 sps:$4 sm:$0xff]   ;;  %v2505_v51 = vld [vmem:[%s2641_s30 + $0x80] ss:$8 sps:$4 sm:$0xff]  }
  0x1d   : > { %v2506_v52 = vld [vmem:[%s2641_s30 + $0x180] ss:$8 sps:$4 sm:$0xff]   ;;  %v2507_v53 = vld [vmem:[%s2641_s30 + $0x94] ss:$8 sps:$4 sm:$0xff]   ;;  %v2511_v55 = vld [vmem:[%s2641_s30 + $0x90] ss:$8 sps:$4 sm:$0xff]  }
  0x1e   : > { %921 = vmatpush1.bf16.msra.mxu0 %v2441_v5  ;;  %2400 = vmatpush1.bf16.msra.mxu1 %v2441_v5  ;;  %v2509_v54 = vld [vmem:[%s2641_s30 + $0x194] ss:$8 sps:$4 sm:$0xff]   ;;  %v2512_v56 = vld [vmem:[%s2641_s30 + $0x190] ss:$8 sps:$4 sm:$0xff]   ;;  %v2513_v57 = vld [vmem:[%s2641_s30 + $0xa4] ss:$8 sps:$4 sm:$0xff]  }
  0x1f   : > { %922 = vmatprep.subr.bf16.mxu0 %v2573_v1  ;;  %2385 = vmatprep.subr.bf16.mxu1 %v2573_v1  ;;  %v2515_v58 = vld [vmem:[%s2641_s30 + $0x1a4] ss:$8 sps:$4 sm:$0xff]   ;;  %v2517_v59 = vld [vmem:[%s2641_s30 + $0xa0] ss:$8 sps:$4 sm:$0xff]   ;;  %v2519_v61 = vld [vmem:[%s2641_s30 + $0xb4] ss:$8 sps:$4 sm:$0xff]  }
  0x20   : > { %v2518_v60 = vld [vmem:[%s2641_s30 + $0x1a0] ss:$8 sps:$4 sm:$0xff]   ;;  %v2521_v62 = vld [vmem:[%s2641_s30 + $0x1b4] ss:$8 sps:$4 sm:$0xff]   ;;  %v2523_v63 = vld [vmem:[%s2641_s30 + $0xb0] ss:$8 sps:$4 sm:$0xff]  }
  0x21   : > { %v2524_v0 = vld [vmem:[%s2641_s30 + $0x1b0] ss:$8 sps:$4 sm:$0xff]   ;;  %v2527_v2 = vld [vmem:[%s2641_s30 + $0x1c4] ss:$8 sps:$4 sm:$0xff]   ;;  %v2529_v3 = vld [vmem:[%s2641_s30 + $0xc0] ss:$8 sps:$4 sm:$0xff]  }
  0x22   : > { %923 = vmatpush1.bf16.msra.mxu0 %v2442_v7  ;;  %2401 = vmatpush1.bf16.msra.mxu1 %v2442_v7  ;;  %v2530_v4 = vld [vmem:[%s2641_s30 + $0x1c0] ss:$8 sps:$4 sm:$0xff]   ;;  %v2531_v5 = vld [vmem:[%s2641_s30 + $0xd4] ss:$8 sps:$4 sm:$0xff]   ;;  %v2535_v7 = vld [vmem:[%s2641_s30 + $0xd0] ss:$8 sps:$4 sm:$0xff]  }
  0x23   : > { %924 = vmatprep.subr.bf16.mxu0 %v2573_v1  ;;  %2386 = vmatprep.subr.bf16.mxu1 %v2573_v1  ;;  %v2533_v6 = vld [vmem:[%s2641_s30 + $0x1d4] ss:$8 sps:$4 sm:$0xff]   ;;  %v2536_v8 = vld [vmem:[%s2641_s30 + $0x1d0] ss:$8 sps:$4 sm:$0xff]  }
  0x26   : > { %925 = vmatpush1.bf16.msra.mxu0 %v2443_v9  ;;  %2402 = vmatpush1.bf16.msra.mxu1 %v2443_v9  ;;  %v2537_v9 = vld [vmem:[%s2641_s30 + $0xe4] ss:$8 sps:$4 sm:$0xff]  }
  0x27   : > { %926 = vmatprep.subr.bf16.mxu0 %v2573_v1  ;;  %2387 = vmatprep.subr.bf16.mxu1 %v2573_v1 }
  0x2a   : > { %927 = vmatpush1.bf16.msra.mxu0 %v2444_v10  ;;  %2403 = vmatpush1.bf16.msra.mxu1 %v2444_v10  ;;  %v2539_v10 = vld [vmem:[%s2641_s30 + $0x1e4] ss:$8 sps:$4 sm:$0xff]  }
  0x2b   : > { %928 = vmatprep.subr.bf16.mxu0 %v2573_v1  ;;  %2388 = vmatprep.subr.bf16.mxu1 %v2573_v1 }
  0x2e   : > { %929 = vmatpush2.bf16.msra.mxu0 %v2445_v11  ;;  %2404 = vmatpush2.bf16.msra.mxu1 %v2445_v11  ;;  %v2541_v11 = vld [vmem:[%s2641_s30 + $0xe0] ss:$8 sps:$4 sm:$0xff]  }
  0x2f   : > { %930 = vmatprep.subr.bf16.mxu0 %v2573_v1  ;;  %2389 = vmatprep.subr.bf16.mxu1 %v2573_v1 }
  0x32   : > { %931 = vmatpush2.bf16.msra.mxu0 %v2446_v12  ;;  %2405 = vmatpush2.bf16.msra.mxu1 %v2446_v12  ;;  %v2542_v12 = vld [vmem:[%s2641_s30 + $0x1e0] ss:$8 sps:$4 sm:$0xff]  }
  0x33   : > { %932 = vmatprep.subr.bf16.mxu0 %v2573_v1  ;;  %2390 = vmatprep.subr.bf16.mxu1 %v2573_v1 }
  0x36   : > { %933 = vmatpush2.bf16.msra.mxu0 %v2447_v13  ;;  %2406 = vmatpush2.bf16.msra.mxu1 %v2447_v13  ;;  %v2543_v13 = vld [vmem:[%s2641_s30 + $0xf4] ss:$8 sps:$4 sm:$0xff]  }
  0x37   : > { %934 = vmatprep.subr.bf16.mxu0 %v2573_v1  ;;  %2391 = vmatprep.subr.bf16.mxu1 %v2573_v1 }
  0x3a   : > { %935 = vmatpush2.bf16.msra.mxu0 %v2448_v14  ;;  %2407 = vmatpush2.bf16.msra.mxu1 %v2448_v14  ;;  %v2545_v14 = vld [vmem:[%s2641_s30 + $0x1f4] ss:$8 sps:$4 sm:$0xff]  }
  0x3b   : > { %936 = vmatprep.subr.bf16.mxu0 %v2573_v1  ;;  %2392 = vmatprep.subr.bf16.mxu1 %v2573_v1 }
  0x3e   : > { %937 = vmatpush2.bf16.msra.mxu0 %v2449_v15  ;;  %2408 = vmatpush2.bf16.msra.mxu1 %v2449_v15  ;;  %v2547_v15 = vld [vmem:[%s2641_s30 + $0xf0] ss:$8 sps:$4 sm:$0xff]  }
  0x3f   : > { %938 = vmatprep.subr.bf16.mxu0 %v2573_v1  ;;  %2393 = vmatprep.subr.bf16.mxu1 %v2573_v1 }
  0x42   : > { %939 = vmatpush2.bf16.msra.mxu0 %v2450_v16  ;;  %2409 = vmatpush2.bf16.msra.mxu1 %v2450_v16  ;;  %v2548_v16 = vld [vmem:[%s2641_s30 + $0x1f0] ss:$8 sps:$4 sm:$0xff]  }
  0x43   : > { %940 = vmatprep.subr.bf16.mxu0 %v2573_v1  ;;  %2394 = vmatprep.subr.bf16.mxu1 %v2573_v1 }
  0x46   : > { %941 = vmatpush2.bf16.msra.mxu0 %v2451_v17  ;;  %2410 = vmatpush2.bf16.msra.mxu1 %v2451_v17 }
  0x47   : > { %942 = vmatprep.subr.bf16.mxu0 %v2573_v1  ;;  %2395 = vmatprep.subr.bf16.mxu1 %v2573_v1  ;;  %v2525_v1 = vld [vmem:[%s2641_s30 + $0xc4] ss:$8 sps:$4 sm:$0xff]  }
  0x4a   : > { %943 = vmatpush2.bf16.msra.mxu0 %v2452_v18  ;;  %2411 = vmatpush2.bf16.msra.mxu1 %v2452_v18  ;;  %v2767_v18 = vld [vmem:[%s2882_s2] ss:$0 sm:$0xff] }
  0x4d   : > { %945 = vmatmul.mubr.bf16.vlgmr.msra.gmra.mxu0 %v2453_v19  ;;  %1073 = vmatmul.mubr.bf16.vlgmr.msra.gmra.mxu1 %v2456_v20 }
  0x4e   : > { %952 = vmatprep.mubr.bf16.mxu0 %v2459_v21  ;;  %1080 = vmatprep.mubr.bf16.mxu1 %v2461_v22 }
  0x55   : > { %953 = vmatmul.mubr.bf16.gmra.mxu0 %v2463_v23  ;;  %1081 = vmatmul.mubr.bf16.gmra.mxu1 %v2464_v24 }
  0x56   : > { %960 = vmatprep.mubr.bf16.mxu0 %v2465_v25  ;;  %1088 = vmatprep.mubr.bf16.mxu1 %v2467_v26 }
  0x5d   : > { %961 = vmatmul.mubr.bf16.gmra.mxu0 %v2469_v27  ;;  %1089 = vmatmul.mubr.bf16.gmra.mxu1 %v2470_v28 }
  0x5e   : > { %968 = vmatprep.mubr.bf16.mxu0 %v2471_v29  ;;  %1096 = vmatprep.mubr.bf16.mxu1 %v2473_v30 }
  0x65   : > { %969 = vmatmul.mubr.bf16.gmra.mxu0 %v2475_v31  ;;  %1097 = vmatmul.mubr.bf16.gmra.mxu1 %v2476_v32 }
  0x66   : > { %976 = vmatprep.mubr.bf16.mxu0 %v2477_v33  ;;  %1104 = vmatprep.mubr.bf16.mxu1 %v2479_v34 }
  0x6d   : > { %977 = vmatmul.mubr.bf16.gmra.mxu0 %v2481_v35  ;;  %1105 = vmatmul.mubr.bf16.gmra.mxu1 %v2482_v36 }
  0x6e   : > { %984 = vmatprep.mubr.bf16.mxu0 %v2483_v37  ;;  %1112 = vmatprep.mubr.bf16.mxu1 %v2485_v38 }
  0x75   : > { %985 = vmatmul.mubr.bf16.gmra.mxu0 %v2487_v39  ;;  %1113 = vmatmul.mubr.bf16.gmra.mxu1 %v2488_v40 }
  0x76   : > { %992 = vmatprep.mubr.bf16.mxu0 %v2489_v41  ;;  %1120 = vmatprep.mubr.bf16.mxu1 %v2491_v42 }
  0x7d   : > { %993 = vmatmul.mubr.bf16.gmra.mxu0 %v2493_v43  ;;  %1121 = vmatmul.mubr.bf16.gmra.mxu1 %v2494_v44 }
  0x7e   : > { %1000 = vmatprep.mubr.bf16.mxu0 %v2495_v45  ;;  %1128 = vmatprep.mubr.bf16.mxu1 %v2497_v46 }
  0x85   : > { %1001 = vmatmul.mubr.bf16.gmra.mxu0 %v2499_v47  ;;  %1129 = vmatmul.mubr.bf16.gmra.mxu1 %v2500_v48 }
  0x86   : > { %1008 = vmatprep.mubr.bf16.mxu0 %v2501_v49  ;;  %1136 = vmatprep.mubr.bf16.mxu1 %v2503_v50 }
  0x8d   : > { %1009 = vmatmul.mubr.bf16.gmra.mxu0 %v2505_v51  ;;  %1137 = vmatmul.mubr.bf16.gmra.mxu1 %v2506_v52 }
  0x8e   : > { %1016 = vmatprep.mubr.bf16.mxu0 %v2507_v53  ;;  %1144 = vmatprep.mubr.bf16.mxu1 %v2509_v54 }
  0x95   : > { %1017 = vmatmul.mubr.bf16.gmra.mxu0 %v2511_v55  ;;  %1145 = vmatmul.mubr.bf16.gmra.mxu1 %v2512_v56 }
  0x96   : > { %1024 = vmatprep.mubr.bf16.mxu0 %v2513_v57  ;;  %1152 = vmatprep.mubr.bf16.mxu1 %v2515_v58 }
  0x9d   : > { %1025 = vmatmul.mubr.bf16.gmra.mxu0 %v2517_v59  ;;  %1153 = vmatmul.mubr.bf16.gmra.mxu1 %v2518_v60 }
  0x9e   : > { %1032 = vmatprep.mubr.bf16.mxu0 %v2519_v61  ;;  %1160 = vmatprep.mubr.bf16.mxu1 %v2521_v62 }
  0xa5   : > { %1033 = vmatmul.mubr.bf16.gmra.mxu0 %v2523_v63  ;;  %1161 = vmatmul.mubr.bf16.gmra.mxu1 %v2524_v0 }
  0xa6   : > { %1040 = vmatprep.mubr.bf16.mxu0 %v2525_v1  ;;  %1168 = vmatprep.mubr.bf16.mxu1 %v2527_v2 }
  0xad   : > { %1041 = vmatmul.mubr.bf16.gmra.mxu0 %v2529_v3  ;;  %1169 = vmatmul.mubr.bf16.gmra.mxu1 %v2530_v4 }
  0xae   : > { %1048 = vmatprep.mubr.bf16.mxu0 %v2531_v5  ;;  %1176 = vmatprep.mubr.bf16.mxu1 %v2533_v6 }
  0xb5   : > { %1049 = vmatmul.mubr.bf16.gmra.mxu0 %v2535_v7  ;;  %1177 = vmatmul.mubr.bf16.gmra.mxu1 %v2536_v8 }
  0xb6   : > { %1056 = vmatprep.mubr.bf16.mxu0 %v2537_v9  ;;  %1184 = vmatprep.mubr.bf16.mxu1 %v2539_v10 }
  0xbd   : > { %1057 = vmatmul.mubr.bf16.gmra.mxu0 %v2541_v11  ;;  %1185 = vmatmul.mubr.bf16.gmra.mxu1 %v2542_v12 }
  0xbe   : > { %1064 = vmatprep.mubr.bf16.mxu0 %v2543_v13  ;;  %1192 = vmatprep.mubr.bf16.mxu1 %v2545_v14 }
  0xc5   : > { %1065 = vmatmul.mubr.bf16.gmra.mxu0 %v2547_v15  ;;  %1193 = vmatmul.mubr.bf16.gmra.mxu1 %v2548_v16 }
 0x10d   : > { %v946_v17 = vpop.f32.mrf.mxu0  ;;  %v1074_v19 = vpop.f32.mrf.mxu1 }
 0x10e   : > { %v1403_v22 = vadd.f32 %v2767_v18, %v946_v17  ;;  %v1435_v23 = vadd.f32 %v2767_v18, %v1074_v19 }
 0x10f   : > { %v948_v20 = vpop.f32.mrf.mxu0  ;;  %v1076_v21 = vpop.f32.mrf.mxu1 }
 0x110   : > { %v1467_v30 = vmax.f32 %v1403_v22, 0.0  ;;  %v1499_v31 = vmax.f32 %v1435_v23, 0.0 }
 0x111   : > { %v949_v24 = vpop.f32.mrf.mxu0  ;;  %v1077_v25 = vpop.f32.mrf.mxu1 }
 0x112   : > { %v1404_v26 = vadd.f32 %v2767_v18, %v949_v24  ;;  %v1436_v27 = vadd.f32 %v2767_v18, %v1077_v25 }
 0x113   : > { %v951_v28 = vpop.f32.mrf.mxu0  ;;  %v1079_v29 = vpop.f32.mrf.mxu1 }
 0x114   : > { %v1468_v32 = vmax.f32 %v1404_v26, 0.0  ;;  %v1500_v33 = vmax.f32 %v1436_v27, 0.0 }
 0x115   : > { %v954_v34 = vpop.f32.mrf.mxu0  ;;  %v1082_v35 = vpop.f32.mrf.mxu1 }
 0x116   : > { %v2192_v36 = vpack.c.bf16 %v1468_v32, %v1467_v30  ;;  %v2272_v37 = vpack.c.bf16 %v1500_v33, %v1499_v31  ;;  %v1405_v40 = vadd.f32 %v2767_v18, %v954_v34  ;;  %v1437_v41 = vadd.f32 %v2767_v18, %v1082_v35 }
 0x117   : > { %v956_v38 = vpop.f32.mrf.mxu0  ;;  %v1084_v39 = vpop.f32.mrf.mxu1 }
 0x118   : > { %2193 = vst [vmem:[%s2777_s8] sm:$0xff] %v2192_v36   ;;  %2364 = vst [vmem:[%s2777_s8 + $0x80] sm:$0xff] %v2272_v37   ;;  %v1469_v48 = vmax.f32 %v1405_v40, 0.0  ;;  %v1501_v49 = vmax.f32 %v1437_v41, 0.0 }
 0x119   : > { %v957_v42 = vpop.f32.mrf.mxu0  ;;  %v1085_v43 = vpop.f32.mrf.mxu1 }
 0x11a   : > { %v1406_v44 = vadd.f32 %v2767_v18, %v957_v42  ;;  %v1438_v45 = vadd.f32 %v2767_v18, %v1085_v43 }
 0x11b   : > { %v959_v46 = vpop.f32.mrf.mxu0  ;;  %v1087_v47 = vpop.f32.mrf.mxu1 }
 0x11c   : > { %v1470_v50 = vmax.f32 %v1406_v44, 0.0  ;;  %v1502_v51 = vmax.f32 %v1438_v45, 0.0 }
 0x11d   : > { %v962_v52 = vpop.f32.mrf.mxu0  ;;  %v1090_v53 = vpop.f32.mrf.mxu1 }
 0x11e   : > { %v2197_v54 = vpack.c.bf16 %v1470_v50, %v1469_v48  ;;  %v2277_v55 = vpack.c.bf16 %v1502_v51, %v1501_v49  ;;  %v1407_v58 = vadd.f32 %v2767_v18, %v962_v52  ;;  %v1439_v59 = vadd.f32 %v2767_v18, %v1090_v53 }
 0x11f   : > { %v964_v56 = vpop.f32.mrf.mxu0  ;;  %v1092_v57 = vpop.f32.mrf.mxu1 }
 0x120   : > { %2349 = vst [vmem:[%s2777_s8 + $0x8] sm:$0xff] %v2197_v54   ;;  %2365 = vst [vmem:[%s2777_s8 + $0x88] sm:$0xff] %v2277_v55   ;;  %v1471_v2 = vmax.f32 %v1407_v58, 0.0  ;;  %v1503_v3 = vmax.f32 %v1439_v59, 0.0 }
 0x121   : > { %v965_v60 = vpop.f32.mrf.mxu0  ;;  %v1093_v61 = vpop.f32.mrf.mxu1 }
 0x122   : > { %v1408_v62 = vadd.f32 %v2767_v18, %v965_v60  ;;  %v1440_v63 = vadd.f32 %v2767_v18, %v1093_v61 }
 0x123   : > { %v967_v0 = vpop.f32.mrf.mxu0  ;;  %v1095_v1 = vpop.f32.mrf.mxu1 }
 0x124   : > { %v1472_v4 = vmax.f32 %v1408_v62, 0.0  ;;  %v1504_v5 = vmax.f32 %v1440_v63, 0.0 }
 0x125   : > { %v970_v6 = vpop.f32.mrf.mxu0  ;;  %v1098_v7 = vpop.f32.mrf.mxu1 }
 0x126   : > { %v2202_v8 = vpack.c.bf16 %v1472_v4, %v1471_v2  ;;  %v2282_v9 = vpack.c.bf16 %v1504_v5, %v1503_v3  ;;  %v1409_v12 = vadd.f32 %v2767_v18, %v970_v6  ;;  %v1441_v13 = vadd.f32 %v2767_v18, %v1098_v7 }
 0x127   : > { %v972_v10 = vpop.f32.mrf.mxu0  ;;  %v1100_v11 = vpop.f32.mrf.mxu1 }
 0x128   : > { %2350 = vst [vmem:[%s2777_s8 + $0x10] sm:$0xff] %v2202_v8   ;;  %2366 = vst [vmem:[%s2777_s8 + $0x90] sm:$0xff] %v2282_v9   ;;  %v1473_v21 = vmax.f32 %v1409_v12, 0.0  ;;  %v1505_v22 = vmax.f32 %v1441_v13, 0.0 }
 0x129   : > { %v973_v14 = vpop.f32.mrf.mxu0  ;;  %v1101_v15 = vpop.f32.mrf.mxu1 }
 0x12a   : > { %v1410_v16 = vadd.f32 %v2767_v18, %v973_v14  ;;  %v1442_v17 = vadd.f32 %v2767_v18, %v1101_v15 }
 0x12b   : > { %v975_v19 = vpop.f32.mrf.mxu0  ;;  %v1103_v20 = vpop.f32.mrf.mxu1 }
 0x12c   : > { %v1474_v23 = vmax.f32 %v1410_v16, 0.0  ;;  %v1506_v24 = vmax.f32 %v1442_v17, 0.0 }
 0x12d   : > { %v978_v25 = vpop.f32.mrf.mxu0  ;;  %v1106_v26 = vpop.f32.mrf.mxu1 }
 0x12e   : > { %v2207_v27 = vpack.c.bf16 %v1474_v23, %v1473_v21  ;;  %v2287_v28 = vpack.c.bf16 %v1506_v24, %v1505_v22  ;;  %v1411_v31 = vadd.f32 %v2767_v18, %v978_v25  ;;  %v1443_v32 = vadd.f32 %v2767_v18, %v1106_v26 }
 0x12f   : > { %v980_v29 = vpop.f32.mrf.mxu0  ;;  %v1108_v30 = vpop.f32.mrf.mxu1 }
 0x130   : > { %2351 = vst [vmem:[%s2777_s8 + $0x18] sm:$0xff] %v2207_v27   ;;  %2367 = vst [vmem:[%s2777_s8 + $0x98] sm:$0xff] %v2287_v28   ;;  %v1475_v39 = vmax.f32 %v1411_v31, 0.0  ;;  %v1507_v40 = vmax.f32 %v1443_v32, 0.0 }
 0x131   : > { %v981_v33 = vpop.f32.mrf.mxu0  ;;  %v1109_v34 = vpop.f32.mrf.mxu1 }
 0x132   : > { %v1412_v35 = vadd.f32 %v2767_v18, %v981_v33  ;;  %v1444_v36 = vadd.f32 %v2767_v18, %v1109_v34 }
 0x133   : > { %v983_v37 = vpop.f32.mrf.mxu0  ;;  %v1111_v38 = vpop.f32.mrf.mxu1 }
 0x134   : > { %v1476_v41 = vmax.f32 %v1412_v35, 0.0  ;;  %v1508_v42 = vmax.f32 %v1444_v36, 0.0 }
 0x135   : > { %v986_v43 = vpop.f32.mrf.mxu0  ;;  %v1114_v44 = vpop.f32.mrf.mxu1 }
 0x136   : > { %v2212_v45 = vpack.c.bf16 %v1476_v41, %v1475_v39  ;;  %v2292_v46 = vpack.c.bf16 %v1508_v42, %v1507_v40  ;;  %v1413_v49 = vadd.f32 %v2767_v18, %v986_v43  ;;  %v1445_v50 = vadd.f32 %v2767_v18, %v1114_v44 }
 0x137   : > { %v988_v47 = vpop.f32.mrf.mxu0  ;;  %v1116_v48 = vpop.f32.mrf.mxu1 }
 0x138   : > { %2352 = vst [vmem:[%s2777_s8 + $0x20] sm:$0xff] %v2212_v45   ;;  %2368 = vst [vmem:[%s2777_s8 + $0xa0] sm:$0xff] %v2292_v46   ;;  %v1477_v57 = vmax.f32 %v1413_v49, 0.0  ;;  %v1509_v58 = vmax.f32 %v1445_v50, 0.0 }
 0x139   : > { %v989_v51 = vpop.f32.mrf.mxu0  ;;  %v1117_v52 = vpop.f32.mrf.mxu1 }
 0x13a   : > { %v1414_v53 = vadd.f32 %v2767_v18, %v989_v51  ;;  %v1446_v54 = vadd.f32 %v2767_v18, %v1117_v52 }
 0x13b   : > { %v991_v55 = vpop.f32.mrf.mxu0  ;;  %v1119_v56 = vpop.f32.mrf.mxu1 }
 0x13c   : > { %v1478_v59 = vmax.f32 %v1414_v53, 0.0  ;;  %v1510_v60 = vmax.f32 %v1446_v54, 0.0 }
 0x13d   : > { %v994_v61 = vpop.f32.mrf.mxu0  ;;  %v1122_v62 = vpop.f32.mrf.mxu1 }
 0x13e   : > { %v2217_v63 = vpack.c.bf16 %v1478_v59, %v1477_v57  ;;  %v2297_v0 = vpack.c.bf16 %v1510_v60, %v1509_v58  ;;  %v1415_v3 = vadd.f32 %v2767_v18, %v994_v61  ;;  %v1447_v4 = vadd.f32 %v2767_v18, %v1122_v62 }
 0x13f   : > { %v996_v1 = vpop.f32.mrf.mxu0  ;;  %v1124_v2 = vpop.f32.mrf.mxu1 }
 0x140   : > { %2353 = vst [vmem:[%s2777_s8 + $0x28] sm:$0xff] %v2217_v63   ;;  %2369 = vst [vmem:[%s2777_s8 + $0xa8] sm:$0xff] %v2297_v0   ;;  %v1479_v11 = vmax.f32 %v1415_v3, 0.0  ;;  %v1511_v12 = vmax.f32 %v1447_v4, 0.0 }
 0x141   : > { %v997_v5 = vpop.f32.mrf.mxu0  ;;  %v1125_v6 = vpop.f32.mrf.mxu1 }
 0x142   : > { %v1416_v7 = vadd.f32 %v2767_v18, %v997_v5  ;;  %v1448_v8 = vadd.f32 %v2767_v18, %v1125_v6 }
 0x143   : > { %v999_v9 = vpop.f32.mrf.mxu0  ;;  %v1127_v10 = vpop.f32.mrf.mxu1 }
 0x144   : > { %v1480_v13 = vmax.f32 %v1416_v7, 0.0  ;;  %v1512_v14 = vmax.f32 %v1448_v8, 0.0 }
 0x145   : > { %v1002_v15 = vpop.f32.mrf.mxu0  ;;  %v1130_v16 = vpop.f32.mrf.mxu1 }
 0x146   : > { %v2222_v17 = vpack.c.bf16 %v1480_v13, %v1479_v11  ;;  %v2302_v19 = vpack.c.bf16 %v1512_v14, %v1511_v12  ;;  %v1417_v22 = vadd.f32 %v2767_v18, %v1002_v15  ;;  %v1449_v23 = vadd.f32 %v2767_v18, %v1130_v16 }
 0x147   : > { %v1004_v20 = vpop.f32.mrf.mxu0  ;;  %v1132_v21 = vpop.f32.mrf.mxu1 }
 0x148   : > { %2354 = vst [vmem:[%s2777_s8 + $0x30] sm:$0xff] %v2222_v17   ;;  %2370 = vst [vmem:[%s2777_s8 + $0xb0] sm:$0xff] %v2302_v19   ;;  %v1481_v30 = vmax.f32 %v1417_v22, 0.0  ;;  %v1513_v31 = vmax.f32 %v1449_v23, 0.0 }
 0x149   : > { %v1005_v24 = vpop.f32.mrf.mxu0  ;;  %v1133_v25 = vpop.f32.mrf.mxu1 }
 0x14a   : > { %v1418_v26 = vadd.f32 %v2767_v18, %v1005_v24  ;;  %v1450_v27 = vadd.f32 %v2767_v18, %v1133_v25 }
 0x14b   : > { %v1007_v28 = vpop.f32.mrf.mxu0  ;;  %v1135_v29 = vpop.f32.mrf.mxu1 }
 0x14c   : > { %v1482_v32 = vmax.f32 %v1418_v26, 0.0  ;;  %v1514_v33 = vmax.f32 %v1450_v27, 0.0 }
 0x14d   : > { %v1010_v34 = vpop.f32.mrf.mxu0  ;;  %v1138_v35 = vpop.f32.mrf.mxu1 }
 0x14e   : > { %v2227_v36 = vpack.c.bf16 %v1482_v32, %v1481_v30  ;;  %v2307_v37 = vpack.c.bf16 %v1514_v33, %v1513_v31  ;;  %v1419_v40 = vadd.f32 %v2767_v18, %v1010_v34  ;;  %v1451_v41 = vadd.f32 %v2767_v18, %v1138_v35 }
 0x14f   : > { %v1012_v38 = vpop.f32.mrf.mxu0  ;;  %v1140_v39 = vpop.f32.mrf.mxu1 }
 0x150   : > { %2355 = vst [vmem:[%s2777_s8 + $0x38] sm:$0xff] %v2227_v36   ;;  %2371 = vst [vmem:[%s2777_s8 + $0xb8] sm:$0xff] %v2307_v37   ;;  %v1483_v48 = vmax.f32 %v1419_v40, 0.0  ;;  %v1515_v49 = vmax.f32 %v1451_v41, 0.0 }
 0x151   : > { %v1013_v42 = vpop.f32.mrf.mxu0  ;;  %v1141_v43 = vpop.f32.mrf.mxu1 }
 0x152   : > { %v1420_v44 = vadd.f32 %v2767_v18, %v1013_v42  ;;  %v1452_v45 = vadd.f32 %v2767_v18, %v1141_v43 }
 0x153   : > { %v1015_v46 = vpop.f32.mrf.mxu0  ;;  %v1143_v47 = vpop.f32.mrf.mxu1 }
 0x154   : > { %v1484_v50 = vmax.f32 %v1420_v44, 0.0  ;;  %v1516_v51 = vmax.f32 %v1452_v45, 0.0 }
 0x155   : > { %v1018_v52 = vpop.f32.mrf.mxu0  ;;  %v1146_v53 = vpop.f32.mrf.mxu1 }
 0x156   : > { %v2232_v54 = vpack.c.bf16 %v1484_v50, %v1483_v48  ;;  %v2312_v55 = vpack.c.bf16 %v1516_v51, %v1515_v49  ;;  %v1421_v58 = vadd.f32 %v2767_v18, %v1018_v52  ;;  %v1453_v59 = vadd.f32 %v2767_v18, %v1146_v53 }
 0x157   : > { %v1020_v56 = vpop.f32.mrf.mxu0  ;;  %v1148_v57 = vpop.f32.mrf.mxu1 }
 0x158   : > { %2356 = vst [vmem:[%s2777_s8 + $0x40] sm:$0xff] %v2232_v54   ;;  %2372 = vst [vmem:[%s2777_s8 + $0xc0] sm:$0xff] %v2312_v55   ;;  %v1485_v2 = vmax.f32 %v1421_v58, 0.0  ;;  %v1517_v3 = vmax.f32 %v1453_v59, 0.0 }
 0x159   : > { %v1021_v60 = vpop.f32.mrf.mxu0  ;;  %v1149_v61 = vpop.f32.mrf.mxu1 }
 0x15a   : > { %v1422_v62 = vadd.f32 %v2767_v18, %v1021_v60  ;;  %v1454_v63 = vadd.f32 %v2767_v18, %v1149_v61 }
 0x15b   : > { %v1023_v0 = vpop.f32.mrf.mxu0  ;;  %v1151_v1 = vpop.f32.mrf.mxu1 }
 0x15c   : > { %v1486_v4 = vmax.f32 %v1422_v62, 0.0  ;;  %v1518_v5 = vmax.f32 %v1454_v63, 0.0 }
 0x15d   : > { %v1026_v6 = vpop.f32.mrf.mxu0  ;;  %v1154_v7 = vpop.f32.mrf.mxu1 }
 0x15e   : > { %v2237_v8 = vpack.c.bf16 %v1486_v4, %v1485_v2  ;;  %v2317_v9 = vpack.c.bf16 %v1518_v5, %v1517_v3  ;;  %v1423_v12 = vadd.f32 %v2767_v18, %v1026_v6  ;;  %v1455_v13 = vadd.f32 %v2767_v18, %v1154_v7 }
 0x15f   : > { %v1028_v10 = vpop.f32.mrf.mxu0  ;;  %v1156_v11 = vpop.f32.mrf.mxu1 }
 0x160   : > { %2357 = vst [vmem:[%s2777_s8 + $0x48] sm:$0xff] %v2237_v8   ;;  %2373 = vst [vmem:[%s2777_s8 + $0xc8] sm:$0xff] %v2317_v9   ;;  %v1487_v21 = vmax.f32 %v1423_v12, 0.0  ;;  %v1519_v22 = vmax.f32 %v1455_v13, 0.0 }
 0x161   : > { %v1029_v14 = vpop.f32.mrf.mxu0  ;;  %v1157_v15 = vpop.f32.mrf.mxu1 }
 0x162   : > { %v1424_v16 = vadd.f32 %v2767_v18, %v1029_v14  ;;  %v1456_v17 = vadd.f32 %v2767_v18, %v1157_v15 }
 0x163   : > { %v1031_v19 = vpop.f32.mrf.mxu0  ;;  %v1159_v20 = vpop.f32.mrf.mxu1 }
 0x164   : > { %v1488_v23 = vmax.f32 %v1424_v16, 0.0  ;;  %v1520_v24 = vmax.f32 %v1456_v17, 0.0 }
 0x165   : > { %v1034_v25 = vpop.f32.mrf.mxu0  ;;  %v1162_v26 = vpop.f32.mrf.mxu1 }
 0x166   : > { %v2242_v27 = vpack.c.bf16 %v1488_v23, %v1487_v21  ;;  %v2322_v28 = vpack.c.bf16 %v1520_v24, %v1519_v22  ;;  %v1425_v31 = vadd.f32 %v2767_v18, %v1034_v25  ;;  %v1457_v32 = vadd.f32 %v2767_v18, %v1162_v26 }
 0x167   : > { %v1036_v29 = vpop.f32.mrf.mxu0  ;;  %v1164_v30 = vpop.f32.mrf.mxu1 }
 0x168   : > { %2358 = vst [vmem:[%s2777_s8 + $0x50] sm:$0xff] %v2242_v27   ;;  %2374 = vst [vmem:[%s2777_s8 + $0xd0] sm:$0xff] %v2322_v28   ;;  %v1489_v39 = vmax.f32 %v1425_v31, 0.0  ;;  %v1521_v40 = vmax.f32 %v1457_v32, 0.0 }
 0x169   : > { %v1037_v33 = vpop.f32.mrf.mxu0  ;;  %v1165_v34 = vpop.f32.mrf.mxu1 }
 0x16a   : > { %v1426_v35 = vadd.f32 %v2767_v18, %v1037_v33  ;;  %v1458_v36 = vadd.f32 %v2767_v18, %v1165_v34 }
 0x16b   : > { %v1039_v37 = vpop.f32.mrf.mxu0  ;;  %v1167_v38 = vpop.f32.mrf.mxu1 }
 0x16c   : > { %v1490_v41 = vmax.f32 %v1426_v35, 0.0  ;;  %v1522_v42 = vmax.f32 %v1458_v36, 0.0 }
 0x16d   : > { %v1042_v43 = vpop.f32.mrf.mxu0  ;;  %v1170_v44 = vpop.f32.mrf.mxu1 }
 0x16e   : > { %v2247_v45 = vpack.c.bf16 %v1490_v41, %v1489_v39  ;;  %v2327_v46 = vpack.c.bf16 %v1522_v42, %v1521_v40  ;;  %v1427_v49 = vadd.f32 %v2767_v18, %v1042_v43  ;;  %v1459_v50 = vadd.f32 %v2767_v18, %v1170_v44 }
 0x16f   : > { %v1044_v47 = vpop.f32.mrf.mxu0  ;;  %v1172_v48 = vpop.f32.mrf.mxu1 }
 0x170   : > { %2359 = vst [vmem:[%s2777_s8 + $0x58] sm:$0xff] %v2247_v45   ;;  %2375 = vst [vmem:[%s2777_s8 + $0xd8] sm:$0xff] %v2327_v46   ;;  %v1491_v57 = vmax.f32 %v1427_v49, 0.0  ;;  %v1523_v58 = vmax.f32 %v1459_v50, 0.0 }
 0x171   : > { %v1045_v51 = vpop.f32.mrf.mxu0  ;;  %v1173_v52 = vpop.f32.mrf.mxu1 }
 0x172   : > { %v1428_v53 = vadd.f32 %v2767_v18, %v1045_v51  ;;  %v1460_v54 = vadd.f32 %v2767_v18, %v1173_v52 }
 0x173   : > { %v1047_v55 = vpop.f32.mrf.mxu0  ;;  %v1175_v56 = vpop.f32.mrf.mxu1 }
 0x174   : > { %v1492_v59 = vmax.f32 %v1428_v53, 0.0  ;;  %v1524_v60 = vmax.f32 %v1460_v54, 0.0 }
 0x175   : > { %v1050_v61 = vpop.f32.mrf.mxu0  ;;  %v1178_v62 = vpop.f32.mrf.mxu1 }
 0x176   : > { %v2252_v63 = vpack.c.bf16 %v1492_v59, %v1491_v57  ;;  %v2332_v0 = vpack.c.bf16 %v1524_v60, %v1523_v58  ;;  %v1429_v3 = vadd.f32 %v2767_v18, %v1050_v61  ;;  %v1461_v4 = vadd.f32 %v2767_v18, %v1178_v62 }
 0x177   : > { %v1052_v1 = vpop.f32.mrf.mxu0  ;;  %v1180_v2 = vpop.f32.mrf.mxu1 }
 0x178   : > { %2360 = vst [vmem:[%s2777_s8 + $0x60] sm:$0xff] %v2252_v63   ;;  %2376 = vst [vmem:[%s2777_s8 + $0xe0] sm:$0xff] %v2332_v0   ;;  %v1493_v11 = vmax.f32 %v1429_v3, 0.0  ;;  %v1525_v12 = vmax.f32 %v1461_v4, 0.0 }
 0x179   : > { %v1053_v5 = vpop.f32.mrf.mxu0  ;;  %v1181_v6 = vpop.f32.mrf.mxu1 }
 0x17a   : > { %v1430_v7 = vadd.f32 %v2767_v18, %v1053_v5  ;;  %v1462_v8 = vadd.f32 %v2767_v18, %v1181_v6 }
 0x17b   : > { %v1055_v9 = vpop.f32.mrf.mxu0  ;;  %v1183_v10 = vpop.f32.mrf.mxu1 }
 0x17c   : > { %v1494_v13 = vmax.f32 %v1430_v7, 0.0  ;;  %v1526_v14 = vmax.f32 %v1462_v8, 0.0 }
 0x17d   : > { %v1058_v15 = vpop.f32.mrf.mxu0  ;;  %v1186_v16 = vpop.f32.mrf.mxu1 }
 0x17e   : > { %v2257_v17 = vpack.c.bf16 %v1494_v13, %v1493_v11  ;;  %v2337_v19 = vpack.c.bf16 %v1526_v14, %v1525_v12  ;;  %v1431_v22 = vadd.f32 %v2767_v18, %v1058_v15  ;;  %v1463_v23 = vadd.f32 %v2767_v18, %v1186_v16 }
 0x17f   : > { %v1060_v20 = vpop.f32.mrf.mxu0  ;;  %v1188_v21 = vpop.f32.mrf.mxu1 }
 0x180   : > { %2361 = vst [vmem:[%s2777_s8 + $0x68] sm:$0xff] %v2257_v17   ;;  %2377 = vst [vmem:[%s2777_s8 + $0xe8] sm:$0xff] %v2337_v19   ;;  %v1495_v30 = vmax.f32 %v1431_v22, 0.0  ;;  %v1527_v31 = vmax.f32 %v1463_v23, 0.0 }
 0x181   : > { %v1061_v24 = vpop.f32.mrf.mxu0  ;;  %v1189_v25 = vpop.f32.mrf.mxu1 }
 0x182   : > { %v1432_v26 = vadd.f32 %v2767_v18, %v1061_v24  ;;  %v1464_v27 = vadd.f32 %v2767_v18, %v1189_v25 }
 0x183   : > { %v1063_v28 = vpop.f32.mrf.mxu0  ;;  %v1191_v29 = vpop.f32.mrf.mxu1 }
 0x184   : > { %v1496_v32 = vmax.f32 %v1432_v26, 0.0  ;;  %v1528_v33 = vmax.f32 %v1464_v27, 0.0 }
 0x185   : > { %v1066_v34 = vpop.f32.mrf.mxu0  ;;  %v1194_v35 = vpop.f32.mrf.mxu1 }
 0x186   : > { %v2262_v36 = vpack.c.bf16 %v1496_v32, %v1495_v30  ;;  %v2342_v37 = vpack.c.bf16 %v1528_v33, %v1527_v31  ;;  %v1433_v40 = vadd.f32 %v2767_v18, %v1066_v34  ;;  %v1465_v41 = vadd.f32 %v2767_v18, %v1194_v35 }
 0x187   : > { %v1068_v38 = vpop.f32.mrf.mxu0  ;;  %v1196_v39 = vpop.f32.mrf.mxu1 }
 0x188   : > { %2362 = vst [vmem:[%s2777_s8 + $0x70] sm:$0xff] %v2262_v36   ;;  %2378 = vst [vmem:[%s2777_s8 + $0xf0] sm:$0xff] %v2342_v37   ;;  %v1497_v48 = vmax.f32 %v1433_v40, 0.0  ;;  %v1529_v49 = vmax.f32 %v1465_v41, 0.0 }
 0x189   : > { %v1069_v42 = vpop.f32.mrf.mxu0  ;;  %v1197_v43 = vpop.f32.mrf.mxu1 }
 0x18a   : > { %v1434_v44 = vadd.f32 %v2767_v18, %v1069_v42  ;;  %v1466_v45 = vadd.f32 %v2767_v18, %v1197_v43 }
 0x18b   : > { %v1071_v46 = vpop.f32.mrf.mxu0  ;;  %v1199_v47 = vpop.f32.mrf.mxu1 }
 0x18c   : > { %v1498_v50 = vmax.f32 %v1434_v44, 0.0  ;;  %v1530_v51 = vmax.f32 %v1466_v45, 0.0 }
 0x18e   : > { %v2267_v52 = vpack.c.bf16 %v1498_v50, %v1497_v48  ;;  %v2347_v53 = vpack.c.bf16 %v1530_v51, %v1529_v49 }
 0x190   : > { %2363 = vst [vmem:[%s2777_s8 + $0x78] sm:$0xff] %v2267_v52   ;;  %2379 = vst [vmem:[%s2777_s8 + $0xf8] sm:$0xff] %v2347_v53  }
 0x191 PF: > { %s13_s14 = sadd.s32 1, %s2571_s14   ;;  %s2884_s12 = smov %s2567_s13 }
 0x192   : > { %p10_p5 = scmp.ge.s32.totalorder %s13_s14, 130   ;;  %s2885_s13 = smov %s2887_s15 }
 0x194   :  { %12 = sbr.rel (!%p10_p5) target bundleno = 2 (0x2), region = 76 }

</bundles_post_ra>
